<compile_context>
chip_gen: v7x
topology: tpu7x:2x2x1
jax: 0.10.0
libtpu: 0.0.40
codegen_flags: <defaults>
</compile_context>

<pallas_src>
import jax
import jax.numpy as jnp
import numpy as np
from jax.experimental import pallas as pl
from jax.experimental.pallas import tpu as pltpu


def refine_kernel(edge_ref, n1_ref, n2_ref, pei_ref, pej_ref, w_ref, out_ref):
    # Block shapes:
    #   edge_ref : (1, tr, E)     n1_ref / n2_ref : (1, tr, H)     tr == ti * S
    #   pei_ref  : (1, S, D)      pej_ref         : (1, ti, D)     (bias folded in)
    #   w_ref    : (E+2H, D) bf16, rows ordered [edge | node1 | node2]
    #   out_ref  : (1, tr, D)
    tr = edge_ref.shape[1]
    S = pei_ref.shape[1]
    D = out_ref.shape[2]
    ti = tr // S

    # Fused "concat + Linear" over [edge | node1 | node2]: one MXU pass.
    # Concatenate in f32 (well-trodden lowering path), then cast operands to bf16;
    # numerically identical to casting first. Accumulation stays f32.
    x = jnp.concatenate([edge_ref[0], n1_ref[0], n2_ref[0]], axis=-1)          # (tr, E+2H)
    acc = jnp.dot(x.astype(jnp.bfloat16), w_ref[...],
                  preferred_element_type=jnp.float32)                          # (tr, D) f32

    # Rank-1 epilogue in f32.
    acc = acc.reshape(ti, S, D)          # free: S is a multiple of 8, last dim unchanged
    acc = acc + pei_ref[...]             # edge_i term: depends only on j -> broadcast over i
    acc = acc + pej_ref[0][:, None, :]   # edge_j term (+bias): depends only on i -> broadcast over j
    out_ref[0] = acc.reshape(tr, D).astype(out_ref.dtype)


def _pick_i_tile(S, B, max_rows=2048):
    """i-tile: a multiple of 8 dividing S, with ti*S <= max_rows when possible,
    and at least 2 grid steps (B * S//ti >= 2) when the shape allows it."""
    cands = [c for c in range(8, S + 1, 8) if S % c == 0]
    fitting = [c for c in cands if c * S <= max_rows]
    ti = max(fitting) if fitting else min(cands)      # never blow up silently
    if B * (S // ti) < 2:                              # keep both v7x TCs busy if we can
        smaller = [c for c in cands if c < ti]
        if smaller:
            ti = max(smaller)
    return ti


def refining_strategy(edge, node1, node2, params, *, ti=None, max_rows=2048):
    B, S0, S1, E = edge.shape
    assert S0 == S1
    H = node1.shape[-1]
    W, b = params["W"], params["b"]   # W: (2H+3E, D), rows [edge|edge_i|edge_j|node1|node2]
    D = W.shape[1]

    # Pad the sequence length to a multiple of 8 (row tiles must be sublane aligned).
    S = ((S0 + 7) // 8) * 8
    if S != S0:
        pad = S - S0
        pad4 = ((0, 0), (0, pad), (0, pad), (0, 0))
        edge = jnp.pad(edge, pad4)
        node1 = jnp.pad(node1, pad4)
        node2 = jnp.pad(node2, pad4)

    # Split W by input feature group.
    w_e, w_ei, w_ej = W[0:E], W[E:2 * E], W[2 * E:3 * E]
    w_n1, w_n2 = W[3 * E:3 * E + H], W[3 * E + H:]

    # Packed weight for the single fused in-kernel matmul (bf16 operands).
    w_packed = jnp.concatenate([w_e, w_n1, w_n2], axis=0).astype(jnp.bfloat16)  # (E+2H, D)

    # Tiny wrapper-side precompute: diagonal projections (full edge_i/edge_j never built).
    diag = jnp.transpose(jnp.diagonal(edge, axis1=1, axis2=2), (0, 2, 1))        # (B, S, E)
    proj_ei = jnp.einsum('bse,ed->bsd', diag, w_ei).astype(jnp.float32)          # per j
    proj_ej = (jnp.einsum('bse,ed->bsd', diag, w_ej) + b).astype(jnp.float32)    # per i, bias folded

    if ti is None:
        ti = _pick_i_tile(S, B, max_rows=max_rows)
    assert S % ti == 0 and ti % 8 == 0
    nI = S // ti
    tr = ti * S                                        # rows per grid step

    # Flatten the (i, j) grid: free metadata reshapes on contiguous arrays.
    edge_f = edge.reshape(B, S * S, E)
    n1_f = node1.reshape(B, S * S, H)
    n2_f = node2.reshape(B, S * S, H)

    in_b = edge.dtype.itemsize
    out_b = edge.dtype.itemsize

    # Explicit VMEM budget from lane-padded (->128), double-buffered blocks.
    lane = lambda c: ((c + 127) // 128) * 128
    per_step = (tr * lane(E) + 2 * tr * lane(H)) * in_b + tr * lane(D) * out_b
    resident = (S * lane(D) + ti * lane(D)) * 4 + (E + 2 * H) * lane(D) * 2
    vmem_limit = int(min(max(3 * (2 * per_step + resident), 32 * 2 ** 20), 64 * 2 ** 20))

    cost = pl.CostEstimate(
        flops=2 * B * S * S * (E + 2 * H) * D + 2 * B * S * S * D,
        transcendentals=0,
        bytes_accessed=B * S * S * ((E + 2 * H) * in_b + D * out_b))

    row_spec = lambda c: pl.BlockSpec((1, tr, c), lambda bb, it: (bb, it, 0))

    out = pl.pallas_call(
        refine_kernel,
        out_shape=jax.ShapeDtypeStruct((B, S * S, D), edge.dtype),
        grid_spec=pltpu.PrefetchScalarGridSpec(
            num_scalar_prefetch=0,
            grid=(B, nI),
            in_specs=[
                row_spec(E), row_spec(H), row_spec(H),                   # edge, node1, node2 tiles
                pl.BlockSpec((1, S, D), lambda bb, it: (bb, 0, 0)),      # proj_ei (per batch)
                pl.BlockSpec((1, ti, D), lambda bb, it: (bb, it, 0)),    # proj_ej (per i-tile)
                pl.BlockSpec((E + 2 * H, D), lambda bb, it: (0, 0)),     # packed weight (resident)
            ],
            out_specs=row_spec(D),
        ),
        compiler_params=pltpu.CompilerParams(
            dimension_semantics=("parallel", "parallel"),
            vmem_limit_bytes=vmem_limit),
        cost_estimate=cost,
    )(edge_f, n1_f, n2_f, proj_ei, proj_ej, w_packed)

    out = out.reshape(B, S, S, D)
    if S != S0:
        out = out[:, :S0, :S0, :]
    return out


def reference(edge, node1, node2, params):
    """Pure-JAX mirror of the PyTorch forward (f32), for verification."""
    W, b = params["W"], params["b"]
    B, S, _, E = edge.shape
    node = jnp.concatenate([node1, node2], axis=-1)
    diag = jnp.transpose(jnp.diagonal(edge, axis1=1, axis2=2), (0, 2, 1))
    edge_i = jnp.broadcast_to(diag[:, None, :, :], (B, S, S, E))
    edge_j = jnp.transpose(edge_i, (0, 2, 1, 3))
    feats = jnp.concatenate([edge, edge_i, edge_j, node], axis=-1)
    return feats @ W + b


if __name__ == "__main__":
    # Small shapes consistent with the module: batch=2, seq=16,
    # hidden_dim=32, edge_dim=16, dim_e=48.
    B, S, H, E, D = 2, 16, 32, 16, 48

    key = jax.random.PRNGKey(0)
    k1, k2, k3, k4, k5 = jax.random.split(key, 5)
    edge = jax.random.normal(k1, (B, S, S, E), jnp.float32)
    node1 = jax.random.normal(k2, (B, S, S, H), jnp.float32)
    node2 = jax.random.normal(k3, (B, S, S, H), jnp.float32)

    # Deterministic Linear params (nn.Linear-style uniform init), W stored as (in, out).
    fan_in = 2 * H + 3 * E
    bound = 1.0 / np.sqrt(fan_in)
    W = jax.random.uniform(k4, (fan_in, D), jnp.float32, -bound, bound)
    bias = jax.random.uniform(k5, (D,), jnp.float32, -bound, bound)
    params = {"W": W, "b": bias}

    out = refining_strategy(edge, node1, node2, params)
    out = jax.block_until_ready(out)

    ref = reference(edge, node1, node2, params)
    assert out.shape == (B, S, S, D)
    # bf16 matmul operands (f32 accumulation) -> relaxed tolerance vs f32 reference.
    np.testing.assert_allclose(np.asarray(out), np.asarray(ref), rtol=2e-2, atol=2e-2)
    print("KERNEL_OK")
</pallas_src>

<mosaic_0001>
module attributes {stable_mosaic.version = 11 : i64} {
  func.func @refine_kernel(%arg0: i32, %arg1: i32, %arg2: memref<1x256x16xf32, #tpu.memory_space<vmem>>, %arg3: memref<1x256x32xf32, #tpu.memory_space<vmem>>, %arg4: memref<1x256x32xf32, #tpu.memory_space<vmem>>, %arg5: memref<1x16x48xf32, #tpu.memory_space<vmem>>, %arg6: memref<1x16x48xf32, #tpu.memory_space<vmem>>, %arg7: memref<80x48xbf16, #tpu.memory_space<vmem>>, %arg8: memref<1x256x48xf32, #tpu.memory_space<vmem>>) attributes {dimension_semantics = [#tpu.dimension_semantics<parallel>, #tpu.dimension_semantics<parallel>], iteration_bounds = array<i64: 2, 1>, scalar_prefetch = 0 : i64, scratch_operands = 0 : i64, tpu.core_type = #tpu.core_type<tc>, window_params = [{transform_indices = @transform_0, window_bounds = array<i64: 1, 256, 16>}, {transform_indices = @transform_1, window_bounds = array<i64: 1, 256, 32>}, {transform_indices = @transform_2, window_bounds = array<i64: 1, 256, 32>}, {transform_indices = @transform_3, window_bounds = array<i64: 1, 16, 48>}, {transform_indices = @transform_4, window_bounds = array<i64: 1, 16, 48>}, {pipeline_mode = #tpu.pipeline_mode<synchronous>, transform_indices = @transform_5, window_bounds = array<i64: 80, 48>}, {transform_indices = @transform_6, window_bounds = array<i64: 1, 256, 48>}]} {
    %c0 = arith.constant 0 : index
    %c0_0 = arith.constant 0 : index
    %c0_1 = arith.constant 0 : index
    %0 = vector.load %arg2[%c0, %c0_0, %c0_1] : memref<1x256x16xf32, #tpu.memory_space<vmem>>, vector<1x256x16xf32>
    %1 = vector.shape_cast %0 : vector<1x256x16xf32> to vector<256x16xf32>
    %c0_2 = arith.constant 0 : index
    %c0_3 = arith.constant 0 : index
    %c0_4 = arith.constant 0 : index
    %2 = vector.load %arg3[%c0_2, %c0_3, %c0_4] : memref<1x256x32xf32, #tpu.memory_space<vmem>>, vector<1x256x32xf32>
    %3 = vector.shape_cast %2 : vector<1x256x32xf32> to vector<256x32xf32>
    %c0_5 = arith.constant 0 : index
    %c0_6 = arith.constant 0 : index
    %c0_7 = arith.constant 0 : index
    %4 = vector.load %arg4[%c0_5, %c0_6, %c0_7] : memref<1x256x32xf32, #tpu.memory_space<vmem>>, vector<1x256x32xf32>
    %5 = vector.shape_cast %4 : vector<1x256x32xf32> to vector<256x32xf32>
    %6 = tpu.concatenate %1, %3, %5 in 1 : vector<256x16xf32>, vector<256x32xf32>, vector<256x32xf32> -> vector<256x80xf32>
    %7 = arith.truncf %6 : vector<256x80xf32> to vector<256x80xbf16>
    %c0_8 = arith.constant 0 : index
    %c0_9 = arith.constant 0 : index
    %8 = vector.load %arg7[%c0_8, %c0_9] : memref<80x48xbf16, #tpu.memory_space<vmem>>, vector<80x48xbf16>
    %cst = arith.constant dense<0.000000e+00> : vector<256x48xf32>
    %9 = tpu.matmul %7, %8, %cst {dimension_numbers = #tpu.dot_dimension_numbers<[1], [0], [0], [1], [0, 0, 1, 1], [], []>} : vector<256x80xbf16>, vector<80x48xbf16>, vector<256x48xf32> -> vector<256x48xf32>
    %10 = vector.shape_cast %9 : vector<256x48xf32> to vector<16x16x48xf32>
    %c0_10 = arith.constant 0 : index
    %c0_11 = arith.constant 0 : index
    %c0_12 = arith.constant 0 : index
    %11 = vector.load %arg5[%c0_10, %c0_11, %c0_12] : memref<1x16x48xf32, #tpu.memory_space<vmem>>, vector<1x16x48xf32>
    %12 = vector.broadcast %11 : vector<1x16x48xf32> to vector<16x16x48xf32>
    %13 = arith.addf %10, %12 : vector<16x16x48xf32>
    %c0_13 = arith.constant 0 : index
    %c0_14 = arith.constant 0 : index
    %c0_15 = arith.constant 0 : index
    %14 = vector.load %arg6[%c0_13, %c0_14, %c0_15] : memref<1x16x48xf32, #tpu.memory_space<vmem>>, vector<1x16x48xf32>
    %15 = vector.shape_cast %14 : vector<1x16x48xf32> to vector<16x48xf32>
    %16 = vector.shape_cast %15 : vector<16x48xf32> to vector<16x1x48xf32>
    %17 = vector.broadcast %16 : vector<16x1x48xf32> to vector<16x16x48xf32>
    %18 = arith.addf %13, %17 : vector<16x16x48xf32>
    %19 = vector.shape_cast %18 : vector<16x16x48xf32> to vector<256x48xf32>
    %c0_16 = arith.constant 0 : index
    %c0_17 = arith.constant 0 : index
    %c0_18 = arith.constant 0 : index
    %20 = vector.load %arg8[%c0_16, %c0_17, %c0_18] : memref<1x256x48xf32, #tpu.memory_space<vmem>>, vector<1x256x48xf32>
    %21 = vector.shape_cast %20 : vector<1x256x48xf32> to vector<256x48xf32>
    %22 = vector.shape_cast %19 : vector<256x48xf32> to vector<1x256x48xf32>
    tpu.vector_store %arg8[%c0_16, %c0_17, %c0_18], %22 {strides = array<i32>} : memref<1x256x48xf32, #tpu.memory_space<vmem>>, vector<1x256x48xf32>,
    return
  }
  func.func @transform_0(%arg0: i32, %arg1: i32) -> (i32, i32, i32) {
    %c0_i32 = arith.constant 0 : i32
    %c0_i32_0 = arith.constant 0 : i32
    return %arg0, %arg1, %c0_i32 : i32, i32, i32
  }
  func.func @transform_1(%arg0: i32, %arg1: i32) -> (i32, i32, i32) {
    %c0_i32 = arith.constant 0 : i32
    %c0_i32_0 = arith.constant 0 : i32
    return %arg0, %arg1, %c0_i32 : i32, i32, i32
  }
  func.func @transform_2(%arg0: i32, %arg1: i32) -> (i32, i32, i32) {
    %c0_i32 = arith.constant 0 : i32
    %c0_i32_0 = arith.constant 0 : i32
    return %arg0, %arg1, %c0_i32 : i32, i32, i32
  }
  func.func @transform_3(%arg0: i32, %arg1: i32) -> (i32, i32, i32) {
    %c0_i32 = arith.constant 0 : i32
    %c0_i32_0 = arith.constant 0 : i32
    %c0_i32_1 = arith.constant 0 : i32
    return %arg0, %c0_i32, %c0_i32_0 : i32, i32, i32
  }
  func.func @transform_4(%arg0: i32, %arg1: i32) -> (i32, i32, i32) {
    %c0_i32 = arith.constant 0 : i32
    %c0_i32_0 = arith.constant 0 : i32
    return %arg0, %arg1, %c0_i32 : i32, i32, i32
  }
  func.func @transform_5(%arg0: i32, %arg1: i32) -> (i32, i32) {
    %c0_i32 = arith.constant 0 : i32
    %c0_i32_0 = arith.constant 0 : i32
    %c0_i32_1 = arith.constant 0 : i32
    return %c0_i32, %c0_i32_0 : i32, i32
  }
  func.func @transform_6(%arg0: i32, %arg1: i32) -> (i32, i32, i32) {
    %c0_i32 = arith.constant 0 : i32
    %c0_i32_0 = arith.constant 0 : i32
    return %arg0, %arg1, %c0_i32 : i32, i32, i32
  }
}

</mosaic_0001>

<bundles_post_ra>
// kernel: tpu_custom_call.1
= control target key start
LH: loop header
LB: loop body
LE: loop exit
PB: predicated region body
PF: predicated region fallthrough
CT: control target
= control target key end

     0   :  { %s1910_s21 = smov 0   ;;  %s1912_s22 = smov 0   ;;  %s2338_s0 = inlined_call_operand.vmem [shape: f32[2,256,16], index: 0, kind: input, shape index: {}]   ;;  %s2339_s1 = inlined_call_operand.vmem [shape: f32[2,256,32], index: 1, kind: input, shape index: {}]   ;;  %s2340_s2 = inlined_call_operand.vmem [shape: f32[2,256,32], index: 2, kind: input, shape index: {}]   ;;  %s2341_s3 = inlined_call_operand.vmem [shape: f32[2,16,48], index: 3, kind: input, shape index: {}]   ;;  %s2342_s4 = inlined_call_operand.vmem [shape: f32[2,16,48], index: 4, kind: input, shape index: {}]   ;;  %s2343_s5 = inlined_call_operand.vmem [shape: bf16[80,48], index: 5, kind: input, shape index: {}]   ;;  %s2344_s6 = inlined_call_operand.vmem [shape: f32[2,256,48], index: 6, kind: output, shape index: {}]  }
   0x1   :  { %s1914_s23 = smov 0  }
   0x2 LB: > { %s28_s24 = sadd.s32 1, %s1866_s22  ;;  %p1541_p0 = scmp.ge.s32.totalorder %s1870_s23, 1  ;;  %s1870_s23 = sphi %s1914_s23, %s16_s23   ;;  %s1866_s22 = sphi %s1912_s22, %s2346_s22   ;;  %s1862_s21 = sphi %s1910_s21, %s2345_s21  }
   0x3   : > { %p30_p1 = scmp.ge.s32.totalorder %s28_s24, 2  ;;  %p294_p2 = scmp.lt.s32.totalorder %s1870_s23, 3 }
   0x5   : > { %s2348_s24 = smov (%p30_p1, %s28_s24), 0  ;;  %p295_p3 = pnand %p1541_p0, %p294_p2 }
   0x6   : > { %p365_p4 = scmp.lt.s32.totalorder (!%p295_p3), %s1862_s21, 1  ;;  %v1843_v0 = vld [vmem:[%s2343_s5] sm:$0xff] (!%p295_p3)   ;;  %v1844_v1 = vld [vmem:[%s2343_s5 + $0x8] sm:$0xff] (!%p295_p3)   ;;  %v1845_v2 = vld [vmem:[%s2343_s5 + $0x10] sm:$0xff] (!%p295_p3)   ;;  %s1872_s14 = smov (!%p295_p3), 16   ;;  %vm772_vm0 = vcmask (!%p295_p3), 130048  }
   0x7   : > { %298 = sbr.rel (%p295_p3) target bundleno = 421 (0x1a5), region = 44  ;;  %1604 = vmatprep.subr.bf16.mxu0 (!%p295_p3), %v1843_v0  ;;  %1646 = vmatprep.subr.bf16.mxu1 (!%p295_p3), %v1843_v0  ;;  %v1846_v14 = vld [vmem:[%s2343_s5 + $0x18] sm:$0xff] (!%p295_p3)   ;;  %s1873_s17 = smov (!%p295_p3), 48   ;;  %v1847_v44 = vld [vmem:[%s2343_s5 + $0x20] sm:$0xff] (!%p295_p3)   ;;  %vm805_vm1 = vcmask (!%p295_p3), 392192   ;;  %vm894_vm2 = vcmask (!%p295_p3), 654336  }
   0x8   : > { %1605 = vmatpush3.bf16.msra.mxu0 (!%p295_p3), %v1843_v0  ;;  %1651 = vmatpush3.bf16.msra.mxu1 (!%p295_p3), %v1843_v0 }
   0x9   : > { %1606 = vmatprep.subr.bf16.mxu0 (!%p295_p3), %v1844_v1  ;;  %1647 = vmatprep.subr.bf16.mxu1 (!%p295_p3), %v1844_v1 }
   0xc   : > { %1607 = vmatpush3.bf16.msra.mxu0 (!%p295_p3), %v1844_v1  ;;  %1652 = vmatpush3.bf16.msra.mxu1 (!%p295_p3), %v1844_v1 }
   0xd   : > { %1608 = vmatprep.subr.bf16.mxu0 (!%p295_p3), %v1845_v2  ;;  %1648 = vmatprep.subr.bf16.mxu1 (!%p295_p3), %v1845_v2 }
   0xe   : > { %s2350_s21 = smov (!%p365_p4, %s1862_s21), 1 }
   0xf   : > { %s1937_s29 = sshll.u32 %s2350_s21, 8  ;;  %s1580_s27 = sshll.u32 %s2350_s21, 4 }
  0x10   : > { %s1943_s8 = scalar_lea.vmem %s2339_s1, %s1937_s29  ;;  %s1958_s13 = scalar_lea.vmem %s2340_s2, %s1937_s29  ;;  %1609 = vmatpush3.bf16.msra.mxu0 %v1845_v2  ;;  %1653 = vmatpush3.bf16.msra.mxu1 %v1845_v2 }
  0x11   : > { %v454_v3 = vld [vmem:[%s1943_s8 + $0x10] sm:$0xff]  ;;  %v455_v4 = vld [vmem:[%s1943_s8 + $0x18] sm:$0xff]  ;;  %v452_v5 = vld [vmem:[%s1943_s8] sm:$0xff]  ;;  %1610 = vmatprep.subr.bf16.mxu0 %v1846_v14  ;;  %1649 = vmatprep.subr.bf16.mxu1 %v1846_v14  ;;  %s2060_s26 = scalar_lea.vmem %s2338_s0, %s1937_s29  ;;  %s407_s7 = scalar_lea.vmem %s2342_s4, %s1580_s27 }
  0x12   : > { %v1693_v6 = vpack.i.bf16 %v455_v4, %v454_v3  ;;  %v453_v7 = vld [vmem:[%s1943_s8 + $0x8] sm:$0xff]  ;;  %v470_v8 = vld [vmem:[%s1943_s8 + $0x90] sm:$0xff]  ;;  %v471_v9 = vld [vmem:[%s1943_s8 + $0x98] sm:$0xff]  ;;  %s398_s9 = scalar_lea.vmem %s2341_s3, %s1580_s27  ;;  %s2210_s12 = scalar_lea.vmem %s2344_s6, %s1937_s29 }
  0x13   : > { %v1683_v10 = vpack.i.bf16 %v453_v7, %v452_v5  ;;  %v468_v11 = vld [vmem:[%s1943_s8 + $0x80] sm:$0xff]  ;;  %v469_v12 = vld [vmem:[%s1943_s8 + $0x88] sm:$0xff]  ;;  %v1698_v13 = vpack.i.bf16 %v471_v9, %v470_v8  ;;  %v502_v22 = vld [vmem:[%s1958_s13 + $0x90] sm:$0xff] }
  0x14   : > { %1694 = vrot.lane.b32.xlu1 %v1693_v6, %s1872_s14  ;;  %v1688_v15 = vpack.i.bf16 %v469_v12, %v468_v11  ;;  %v500_v16 = vld [vmem:[%s1958_s13 + $0x80] sm:$0xff]  ;;  %v501_v17 = vld [vmem:[%s1958_s13 + $0x88] sm:$0xff]  ;;  %v503_v23 = vld [vmem:[%s1958_s13 + $0x98] sm:$0xff]  ;;  %1611 = vmatpush3.bf16.msra.mxu0 %v1846_v14 }
  0x15   : > { %1684 = vrot.lane.b32.xlu0 %v1683_v10, %s1872_s14  ;;  %v484_v18 = vld [vmem:[%s1958_s13] sm:$0xff]  ;;  %v485_v19 = vld [vmem:[%s1958_s13 + $0x8] sm:$0xff]  ;;  %v1708_v20 = vpack.i.bf16 %v501_v17, %v500_v16  ;;  %v486_v24 = vld [vmem:[%s1958_s13 + $0x10] sm:$0xff]  ;;  %1654 = vmatpush3.bf16.msra.mxu1 %v1846_v14  ;;  %v1718_v26 = vpack.i.bf16 %v503_v23, %v502_v22 }
  0x16   : > { %v1703_v21 = vpack.i.bf16 %v485_v19, %v484_v18  ;;  %v487_v25 = vld [vmem:[%s1958_s13 + $0x18] sm:$0xff]  ;;  %v472_v28 = vld [vmem:[%s1943_s8 + $0xa0] sm:$0xff]  ;;  %v473_v29 = vld [vmem:[%s1943_s8 + $0xa8] sm:$0xff]  ;;  %1612 = vmatprep.subr.bf16.mxu0 %v1847_v44  ;;  %1650 = vmatprep.subr.bf16.mxu1 %v1847_v44 }
  0x17   : > { %v1713_v27 = vpack.i.bf16 %v487_v25, %v486_v24  ;;  %v456_v30 = vld [vmem:[%s1943_s8 + $0x20] sm:$0xff]  ;;  %v457_v31 = vld [vmem:[%s1943_s8 + $0x28] sm:$0xff]  ;;  %v1728_v32 = vpack.i.bf16 %v473_v29, %v472_v28  ;;  %v474_v34 = vld [vmem:[%s1943_s8 + $0xb0] sm:$0xff] }
  0x18   : > { %1699 = vrot.lane.b32.xlu1 %v1698_v13, %s1872_s14  ;;  %v1723_v33 = vpack.i.bf16 %v457_v31, %v456_v30  ;;  %v475_v35 = vld [vmem:[%s1943_s8 + $0xb8] sm:$0xff]  ;;  %v458_v36 = vld [vmem:[%s1943_s8 + $0x30] sm:$0xff]  ;;  %v504_v40 = vld [vmem:[%s1958_s13 + $0xa0] sm:$0xff]  ;;  %1613 = vmatpush3.bf16.msra.mxu0 %v1847_v44 }
  0x19   : > { %1689 = vrot.lane.b32.xlu0 %v1688_v15, %s1872_s14  ;;  %v459_v37 = vld [vmem:[%s1943_s8 + $0x38] sm:$0xff]  ;;  %v1738_v38 = vpack.i.bf16 %v475_v35, %v474_v34  ;;  %v505_v41 = vld [vmem:[%s1958_s13 + $0xa8] sm:$0xff]  ;;  %v488_v42 = vld [vmem:[%s1958_s13 + $0x20] sm:$0xff]  ;;  %1655 = vmatpush3.bf16.msra.mxu1 %v1847_v44 }
  0x1a   : > { %v1733_v39 = vpack.i.bf16 %v459_v37, %v458_v36  ;;  %v489_v43 = vld [vmem:[%s1958_s13 + $0x28] sm:$0xff]  ;;  %v1748_v45 = vpack.i.bf16 %v505_v41, %v504_v40  ;;  %v506_v47 = vld [vmem:[%s1958_s13 + $0xb0] sm:$0xff]  ;;  %v507_v48 = vld [vmem:[%s1958_s13 + $0xb8] sm:$0xff] }
  0x1b   : > { %v1743_v46 = vpack.i.bf16 %v489_v43, %v488_v42  ;;  %v490_v49 = vld [vmem:[%s1958_s13 + $0x30] sm:$0xff]  ;;  %v491_v50 = vld [vmem:[%s1958_s13 + $0x38] sm:$0xff]  ;;  %v1758_v51 = vpack.i.bf16 %v507_v48, %v506_v47  ;;  %v476_v53 = vld [vmem:[%s1943_s8 + $0xc0] sm:$0xff] }
  0x1c   : > { %1709 = vrot.lane.b32.xlu1 %v1708_v20, %s1873_s17  ;;  %v1753_v52 = vpack.i.bf16 %v491_v50, %v490_v49  ;;  %v477_v54 = vld [vmem:[%s1943_s8 + $0xc8] sm:$0xff]  ;;  %v460_v55 = vld [vmem:[%s1943_s8 + $0x40] sm:$0xff]  ;;  %v478_v59 = vld [vmem:[%s1943_s8 + $0xd0] sm:$0xff] }
  0x1d   : > { %1704 = vrot.lane.b32.xlu0 %v1703_v21, %s1873_s17  ;;  %v461_v56 = vld [vmem:[%s1943_s8 + $0x48] sm:$0xff]  ;;  %v1768_v57 = vpack.i.bf16 %v477_v54, %v476_v53  ;;  %v479_v60 = vld [vmem:[%s1943_s8 + $0xd8] sm:$0xff]  ;;  %v462_v61 = vld [vmem:[%s1943_s8 + $0x50] sm:$0xff] }
  0x1e   : > { %v1763_v58 = vpack.i.bf16 %v461_v56, %v460_v55  ;;  %v463_v62 = vld [vmem:[%s1943_s8 + $0x58] sm:$0xff]  ;;  %v1778_v63 = vpack.i.bf16 %v479_v60, %v478_v59  ;;  %v508_v1 = vld [vmem:[%s1958_s13 + $0xc0] sm:$0xff]  ;;  %v509_v2 = vld [vmem:[%s1958_s13 + $0xc8] sm:$0xff] }
  0x1f   : > { %v1773_v0 = vpack.i.bf16 %v463_v62, %v462_v61  ;;  %v492_v3 = vld [vmem:[%s1958_s13 + $0x40] sm:$0xff]  ;;  %v493_v4 = vld [vmem:[%s1958_s13 + $0x48] sm:$0xff]  ;;  %v1788_v5 = vpack.i.bf16 %v509_v2, %v508_v1  ;;  %v510_v7 = vld [vmem:[%s1958_s13 + $0xd0] sm:$0xff] }
  0x20   : > { %1719 = vrot.lane.b32.xlu1 %v1718_v26, %s1873_s17  ;;  %v1783_v6 = vpack.i.bf16 %v493_v4, %v492_v3  ;;  %v511_v8 = vld [vmem:[%s1958_s13 + $0xd8] sm:$0xff]  ;;  %v494_v9 = vld [vmem:[%s1958_s13 + $0x50] sm:$0xff]  ;;  %v480_v13 = vld [vmem:[%s1943_s8 + $0xe0] sm:$0xff] }
  0x21   : > { %1714 = vrot.lane.b32.xlu0 %v1713_v27, %s1873_s17  ;;  %v495_v10 = vld [vmem:[%s1958_s13 + $0x58] sm:$0xff]  ;;  %v1798_v11 = vpack.i.bf16 %v511_v8, %v510_v7  ;;  %v481_v14 = vld [vmem:[%s1943_s8 + $0xe8] sm:$0xff]  ;;  %v464_v15 = vld [vmem:[%s1943_s8 + $0x60] sm:$0xff] }
  0x22   : > { %v1793_v12 = vpack.i.bf16 %v495_v10, %v494_v9  ;;  %v465_v16 = vld [vmem:[%s1943_s8 + $0x68] sm:$0xff]  ;;  %v1808_v17 = vpack.i.bf16 %v481_v14, %v480_v13  ;;  %v482_v19 = vld [vmem:[%s1943_s8 + $0xf0] sm:$0xff]  ;;  %v483_v20 = vld [vmem:[%s1943_s8 + $0xf8] sm:$0xff] }
  0x23   : > { %v1803_v18 = vpack.i.bf16 %v465_v16, %v464_v15  ;;  %v466_v21 = vld [vmem:[%s1943_s8 + $0x70] sm:$0xff]  ;;  %v467_v22 = vld [vmem:[%s1943_s8 + $0x78] sm:$0xff]  ;;  %v1818_v23 = vpack.i.bf16 %v483_v20, %v482_v19  ;;  %v512_v25 = vld [vmem:[%s1958_s13 + $0xe0] sm:$0xff] }
  0x24   : > { %1729 = vrot.lane.b32.xlu1 %v1728_v32, %s1872_s14  ;;  %v1813_v24 = vpack.i.bf16 %v467_v22, %v466_v21  ;;  %v513_v26 = vld [vmem:[%s1958_s13 + $0xe8] sm:$0xff]  ;;  %v496_v27 = vld [vmem:[%s1958_s13 + $0x60] sm:$0xff]  ;;  %v514_v31 = vld [vmem:[%s1958_s13 + $0xf0] sm:$0xff] }
  0x25   : > { %1724 = vrot.lane.b32.xlu0 %v1723_v33, %s1872_s14  ;;  %v497_v28 = vld [vmem:[%s1958_s13 + $0x68] sm:$0xff]  ;;  %v1828_v29 = vpack.i.bf16 %v513_v26, %v512_v25  ;;  %v515_v32 = vld [vmem:[%s1958_s13 + $0xf8] sm:$0xff]  ;;  %v498_v33 = vld [vmem:[%s1958_s13 + $0x70] sm:$0xff] }
  0x26   : > { %v1823_v30 = vpack.i.bf16 %v497_v28, %v496_v27  ;;  %v499_v34 = vld [vmem:[%s1958_s13 + $0x78] sm:$0xff]  ;;  %v1838_v35 = vpack.i.bf16 %v515_v32, %v514_v31  ;;  %v420_v50 = vld [vmem:[%s2060_s26] sm:$0xff]  ;;  %v438_v61 = vld [vmem:[%s2060_s26 + $0x90] sm:$0xff] }
  0x27   : > { %v1833_v36 = vpack.i.bf16 %v499_v34, %v498_v33  ;;  %v439_v62 = vld [vmem:[%s2060_s26 + $0x98] sm:$0xff]  ;;  %v422_v3 = vld [vmem:[%s2060_s26 + $0x10] sm:$0xff]  ;;  %v441_v31 = vld [vmem:[%s2060_s26 + $0xa8] sm:$0xff] }
  0x28   : > { %1739 = vrot.lane.b32.xlu1 %v1738_v38, %s1872_s14  ;;  %v423_v4 = vld [vmem:[%s2060_s26 + $0x18] sm:$0xff] }
  0x29   : > { %1734 = vrot.lane.b32.xlu0 %v1733_v39, %s1872_s14 }
  0x2c   : > { %1749 = vrot.lane.b32.xlu1 %v1748_v45, %s1873_s17  ;;  %v436_v45 = vld [vmem:[%s2060_s26 + $0x80] sm:$0xff] }
  0x2d   : > { %1744 = vrot.lane.b32.xlu0 %v1743_v46, %s1873_s17  ;;  %v437_v46 = vld [vmem:[%s2060_s26 + $0x88] sm:$0xff] }
  0x30   : > { %1759 = vrot.lane.b32.xlu1 %v1758_v51, %s1873_s17  ;;  %v421_v51 = vld [vmem:[%s2060_s26 + $0x8] sm:$0xff] }
  0x31   : > { %1754 = vrot.lane.b32.xlu0 %v1753_v52, %s1873_s17 }
  0x34   : > { %1769 = vrot.lane.b32.xlu1 %v1768_v57, %s1872_s14 }
  0x35   : > { %1764 = vrot.lane.b32.xlu0 %v1763_v58, %s1872_s14 }
  0x38   : > { %1779 = vrot.lane.b32.xlu1 %v1778_v63, %s1872_s14 }
  0x39   : > { %1774 = vrot.lane.b32.xlu0 %v1773_v0, %s1872_s14 }
  0x3c   : > { %1789 = vrot.lane.b32.xlu1 %v1788_v5, %s1873_s17 }
  0x3d   : > { %1784 = vrot.lane.b32.xlu0 %v1783_v6, %s1873_s17 }
  0x40   : > { %1799 = vrot.lane.b32.xlu1 %v1798_v11, %s1873_s17 }
  0x41   : > { %1794 = vrot.lane.b32.xlu0 %v1793_v12, %s1873_s17 }
  0x44   : > { %1809 = vrot.lane.b32.xlu1 %v1808_v17, %s1872_s14 }
  0x45   : > { %1804 = vrot.lane.b32.xlu0 %v1803_v18, %s1872_s14 }
  0x48   : > { %1819 = vrot.lane.b32.xlu1 %v1818_v23, %s1872_s14 }
  0x49   : > { %1814 = vrot.lane.b32.xlu0 %v1813_v24, %s1872_s14 }
  0x4c   : > { %1829 = vrot.lane.b32.xlu1 %v1828_v29, %s1873_s17 }
  0x4d   : > { %1824 = vrot.lane.b32.xlu0 %v1823_v30, %s1873_s17  ;;  %v440_v30 = vld [vmem:[%s2060_s26 + $0xa0] sm:$0xff] }
  0x50   : > { %1839 = vrot.lane.b32.xlu1 %v1838_v35, %s1873_s17  ;;  %v424_v35 = vld [vmem:[%s2060_s26 + $0x20] sm:$0xff] }
  0x51   : > { %1834 = vrot.lane.b32.xlu0 %v1833_v36, %s1873_s17  ;;  %v425_v36 = vld [vmem:[%s2060_s26 + $0x28] sm:$0xff] }
  0x86   : > { %v1695_v37 = vpop.permute.xlu1 %1694 }
  0x87   : > { %v1685_v38 = vpop.permute.xlu0 %1684  ;;  %v1697_v47 = vunpack.i.h.bf16 %v1695_v37  ;;  %v1696_v48 = vunpack.i.l.bf16 %v1695_v37 }
  0x88   : > { %v1687_v43 = vunpack.i.h.bf16 %v1685_v38  ;;  %v1686_v44 = vunpack.i.l.bf16 %v1685_v38 }
  0x89   : > { %v775_v17 = vsel %vm772_vm0, %v422_v3, %v1696_v48  ;;  %v776_v18 = vsel %vm772_vm0, %v423_v4, %v1697_v47 }
  0x8a   : > { %v1700_v39 = vpop.permute.xlu1 %1699  ;;  %v773_v63 = vsel %vm772_vm0, %v420_v50, %v1686_v44  ;;  %v774_v0 = vsel %vm772_vm0, %v421_v51, %v1687_v43  ;;  %v443_v50 = vld [vmem:[%s2060_s26 + $0xb8] sm:$0xff] }
  0x8b   : > { %v1690_v40 = vpop.permute.xlu0 %1689  ;;  %v1702_v52 = vunpack.i.h.bf16 %v1700_v39  ;;  %v1701_v53 = vunpack.i.l.bf16 %v1700_v39 }
  0x8c   : > { %v1692_v41 = vunpack.i.h.bf16 %v1690_v40  ;;  %v1691_v42 = vunpack.i.l.bf16 %v1690_v40 }
  0x8d   : > { %v791_v13 = vsel %vm772_vm0, %v438_v61, %v1701_v53  ;;  %v792_v14 = vsel %vm772_vm0, %v439_v62, %v1702_v52 }
  0x8e   : > { %v1710_v49 = vpop.permute.xlu1 %1709  ;;  %v789_v59 = vsel %vm772_vm0, %v436_v45, %v1691_v42  ;;  %v790_v60 = vsel %vm772_vm0, %v437_v46, %v1692_v41 }
  0x8f   : > { %v1712_v54 = vunpack.i.h.bf16 %v1710_v49  ;;  %v1711_v55 = vunpack.i.l.bf16 %v1710_v49  ;;  %v1705_v56 = vpop.permute.xlu0 %1704  ;;  %v442_v49 = vld [vmem:[%s2060_s26 + $0xb0] sm:$0xff] }
  0x90   : > { %v1707_v57 = vunpack.i.h.bf16 %v1705_v56  ;;  %v1706_v58 = vunpack.i.l.bf16 %v1705_v56  ;;  %v427_v56 = vld [vmem:[%s2060_s26 + $0x38] sm:$0xff] }
  0x91   : > { %v822_v1 = vsel %vm805_vm1, %v789_v59, %v1711_v55  ;;  %v823_v2 = vsel %vm805_vm1, %v790_v60, %v1712_v54  ;;  %v426_v55 = vld [vmem:[%s2060_s26 + $0x30] sm:$0xff] }
  0x92   : > { %v1720_v5 = vpop.permute.xlu1 %1719  ;;  %v806_v6 = vsel %vm805_vm1, %v773_v63, %v1706_v58  ;;  %v807_v7 = vsel %vm805_vm1, %v774_v0, %v1707_v57  ;;  %v846_v8 = vpack.c.bf16 %v823_v2, %v822_v1 }
  0x93   : > { %v1722_v9 = vunpack.i.h.bf16 %v1720_v5  ;;  %v1721_v10 = vunpack.i.l.bf16 %v1720_v5  ;;  %v1715_v11 = vpop.permute.xlu0 %1714  ;;  %v838_v12 = vpack.c.bf16 %v807_v7, %v806_v6 }
  0x94   : > { %v1717_v15 = vunpack.i.h.bf16 %v1715_v11  ;;  %v1716_v16 = vunpack.i.l.bf16 %v1715_v11  ;;  %1630 = vmatprep.mubr.msk.bf16.mxu1 %vm894_vm2, %v846_v8 }
  0x95   : > { %v824_v19 = vsel %vm805_vm1, %v791_v13, %v1721_v10  ;;  %v825_v20 = vsel %vm805_vm1, %v792_v14, %v1722_v9  ;;  %1614 = vmatprep.mubr.msk.bf16.mxu0 %vm894_vm2, %v838_v12 }
  0x96   : > { %v847_v21 = vpack.c.bf16 %v825_v20, %v824_v19  ;;  %v808_v22 = vsel %vm805_vm1, %v775_v17, %v1716_v16  ;;  %v809_v23 = vsel %vm805_vm1, %v776_v18, %v1717_v15  ;;  %v1730_v24 = vpop.permute.xlu1 %1729  ;;  %v444_v18 = vld [vmem:[%s2060_s26 + $0xc0] sm:$0xff]  ;;  %v445_v19 = vld [vmem:[%s2060_s26 + $0xc8] sm:$0xff] }
  0x97   : > { %v839_v25 = vpack.c.bf16 %v809_v23, %v808_v22  ;;  %v1725_v26 = vpop.permute.xlu0 %1724  ;;  %v1732_v27 = vunpack.i.h.bf16 %v1730_v24  ;;  %v1731_v28 = vunpack.i.l.bf16 %v1730_v24  ;;  %v428_v23 = vld [vmem:[%s2060_s26 + $0x40] sm:$0xff]  ;;  %v429_v24 = vld [vmem:[%s2060_s26 + $0x48] sm:$0xff] }
  0x98   : > { %1631 = vmatmul.mubr.msk.bf16.vlgmr.msra.gmra.mrb[0].mxu1 %vm894_vm2, %v847_v21  ;;  %v1727_v32 = vunpack.i.h.bf16 %v1725_v26  ;;  %v1726_v33 = vunpack.i.l.bf16 %v1725_v26 }
  0x99   : > { %1615 = vmatmul.mubr.msk.bf16.vlgmr.msra.gmra.mrb[0].mxu0 %vm894_vm2, %v839_v25  ;;  %v793_v37 = vsel %vm772_vm0, %v440_v30, %v1731_v28  ;;  %v794_v38 = vsel %vm772_vm0, %v441_v31, %v1732_v27 }
  0x9a   : > { %v1740_v29 = vpop.permute.xlu1 %1739  ;;  %v777_v40 = vsel %vm772_vm0, %v424_v35, %v1726_v33  ;;  %v778_v41 = vsel %vm772_vm0, %v425_v36, %v1727_v32 }
  0x9b   : > { %v1735_v34 = vpop.permute.xlu0 %1734  ;;  %v1742_v45 = vunpack.i.h.bf16 %v1740_v29  ;;  %v1741_v46 = vunpack.i.l.bf16 %v1740_v29 }
  0x9c   : > { %v1737_v51 = vunpack.i.h.bf16 %v1735_v34  ;;  %v1736_v52 = vunpack.i.l.bf16 %v1735_v34 }
  0x9d   : > { %v795_v1 = vsel %vm772_vm0, %v442_v49, %v1741_v46  ;;  %v796_v2 = vsel %vm772_vm0, %v443_v50, %v1742_v45 }
  0x9e   : > { %v1750_v39 = vpop.permute.xlu1 %1749  ;;  %v779_v5 = vsel %vm772_vm0, %v426_v55, %v1736_v52  ;;  %v780_v6 = vsel %vm772_vm0, %v427_v56, %v1737_v51 }
  0x9f   : > { %v1752_v42 = vunpack.i.h.bf16 %v1750_v39  ;;  %v1751_v43 = vunpack.i.l.bf16 %v1750_v39  ;;  %v1745_v44 = vpop.permute.xlu0 %1744 }
  0xa0   : > { %v1747_v47 = vunpack.i.h.bf16 %v1745_v44  ;;  %v1746_v48 = vunpack.i.l.bf16 %v1745_v44  ;;  %v431_v44 = vld [vmem:[%s2060_s26 + $0x58] sm:$0xff] }
  0xa1   : > { %v826_v53 = vsel %vm805_vm1, %v793_v37, %v1751_v43  ;;  %v827_v54 = vsel %vm805_vm1, %v794_v38, %v1752_v42  ;;  %v446_v37 = vld [vmem:[%s2060_s26 + $0xd0] sm:$0xff]  ;;  %v447_v38 = vld [vmem:[%s2060_s26 + $0xd8] sm:$0xff] }
  0xa2   : > { %v848_v57 = vpack.c.bf16 %v827_v54, %v826_v53  ;;  %v810_v58 = vsel %vm805_vm1, %v777_v40, %v1746_v48  ;;  %v811_v59 = vsel %vm805_vm1, %v778_v41, %v1747_v47  ;;  %v1760_v60 = vpop.permute.xlu1 %1759  ;;  %v430_v43 = vld [vmem:[%s2060_s26 + $0x50] sm:$0xff] }
  0xa3   : > { %v840_v61 = vpack.c.bf16 %v811_v59, %v810_v58  ;;  %v1762_v62 = vunpack.i.h.bf16 %v1760_v60  ;;  %v1761_v63 = vunpack.i.l.bf16 %v1760_v60  ;;  %v1755_v0 = vpop.permute.xlu0 %1754 }
  0xa4   : > { %v1757_v3 = vunpack.i.h.bf16 %v1755_v0  ;;  %v1756_v4 = vunpack.i.l.bf16 %v1755_v0  ;;  %1634 = vmatprep.mubr.msk.bf16.mxu1 %vm894_vm2, %v848_v57 }
  0xa5   : > { %v828_v7 = vsel %vm805_vm1, %v795_v1, %v1761_v63  ;;  %v829_v8 = vsel %vm805_vm1, %v796_v2, %v1762_v62  ;;  %1618 = vmatprep.mubr.msk.bf16.mxu0 %vm894_vm2, %v840_v61 }
  0xa6   : > { %v849_v9 = vpack.c.bf16 %v829_v8, %v828_v7  ;;  %v812_v10 = vsel %vm805_vm1, %v779_v5, %v1756_v4  ;;  %v813_v11 = vsel %vm805_vm1, %v780_v6, %v1757_v3  ;;  %v1770_v12 = vpop.permute.xlu1 %1769  ;;  %v448_v6 = vld [vmem:[%s2060_s26 + $0xe0] sm:$0xff]  ;;  %v449_v7 = vld [vmem:[%s2060_s26 + $0xe8] sm:$0xff] }
  0xa7   : > { %v841_v13 = vpack.c.bf16 %v813_v11, %v812_v10  ;;  %v1765_v14 = vpop.permute.xlu0 %1764  ;;  %v1772_v15 = vunpack.i.h.bf16 %v1770_v12  ;;  %v1771_v16 = vunpack.i.l.bf16 %v1770_v12  ;;  %v432_v11 = vld [vmem:[%s2060_s26 + $0x60] sm:$0xff]  ;;  %v433_v12 = vld [vmem:[%s2060_s26 + $0x68] sm:$0xff] }
  0xa8   : > { %1635 = vmatmul.mubr.msk.bf16.gmra.mrb[4].mxu1 %vm894_vm2, %v849_v9  ;;  %v1767_v20 = vunpack.i.h.bf16 %v1765_v14  ;;  %v1766_v21 = vunpack.i.l.bf16 %v1765_v14 }
  0xa9   : > { %1619 = vmatmul.mubr.msk.bf16.gmra.mrb[4].mxu0 %vm894_vm2, %v841_v13  ;;  %v797_v25 = vsel %vm772_vm0, %v444_v18, %v1771_v16  ;;  %v798_v26 = vsel %vm772_vm0, %v445_v19, %v1772_v15 }
  0xaa   : > { %v1780_v17 = vpop.permute.xlu1 %1779  ;;  %v781_v28 = vsel %vm772_vm0, %v428_v23, %v1766_v21  ;;  %v782_v29 = vsel %vm772_vm0, %v429_v24, %v1767_v20 }
  0xab   : > { %v1775_v22 = vpop.permute.xlu0 %1774  ;;  %v1782_v33 = vunpack.i.h.bf16 %v1780_v17  ;;  %v1781_v34 = vunpack.i.l.bf16 %v1780_v17 }
  0xac   : > { %v1777_v39 = vunpack.i.h.bf16 %v1775_v22  ;;  %v1776_v40 = vunpack.i.l.bf16 %v1775_v22 }
  0xad   : > { %v799_v53 = vsel %vm772_vm0, %v446_v37, %v1781_v34  ;;  %v800_v54 = vsel %vm772_vm0, %v447_v38, %v1782_v33 }
  0xae   : > { %v1790_v27 = vpop.permute.xlu1 %1789  ;;  %v783_v57 = vsel %vm772_vm0, %v430_v43, %v1776_v40  ;;  %v784_v58 = vsel %vm772_vm0, %v431_v44, %v1777_v39 }
  0xaf   : > { %v1792_v30 = vunpack.i.h.bf16 %v1790_v27  ;;  %v1791_v31 = vunpack.i.l.bf16 %v1790_v27  ;;  %v1785_v32 = vpop.permute.xlu0 %1784 }
  0xb0   : > { %v1787_v35 = vunpack.i.h.bf16 %v1785_v32  ;;  %v1786_v36 = vunpack.i.l.bf16 %v1785_v32  ;;  %v435_v32 = vld [vmem:[%s2060_s26 + $0x78] sm:$0xff] }
  0xb1   : > { %v830_v41 = vsel %vm805_vm1, %v797_v25, %v1791_v31  ;;  %v831_v42 = vsel %vm805_vm1, %v798_v26, %v1792_v30  ;;  %v450_v25 = vld [vmem:[%s2060_s26 + $0xf0] sm:$0xff]  ;;  %v451_v26 = vld [vmem:[%s2060_s26 + $0xf8] sm:$0xff] }
  0xb2   : > { %v850_v45 = vpack.c.bf16 %v831_v42, %v830_v41  ;;  %v814_v46 = vsel %vm805_vm1, %v781_v28, %v1786_v36  ;;  %v815_v47 = vsel %vm805_vm1, %v782_v29, %v1787_v35  ;;  %v1800_v48 = vpop.permute.xlu1 %1799  ;;  %v434_v31 = vld [vmem:[%s2060_s26 + $0x70] sm:$0xff] }
  0xb3   : > { %v842_v49 = vpack.c.bf16 %v815_v47, %v814_v46  ;;  %v1802_v50 = vunpack.i.h.bf16 %v1800_v48  ;;  %v1801_v51 = vunpack.i.l.bf16 %v1800_v48  ;;  %v1795_v52 = vpop.permute.xlu0 %1794 }
  0xb4   : > { %v1797_v55 = vunpack.i.h.bf16 %v1795_v52  ;;  %v1796_v56 = vunpack.i.l.bf16 %v1795_v52  ;;  %1638 = vmatprep.mubr.msk.bf16.mxu1 %vm894_vm2, %v850_v45 }
  0xb5   : > { %v832_v59 = vsel %vm805_vm1, %v799_v53, %v1801_v51  ;;  %v833_v60 = vsel %vm805_vm1, %v800_v54, %v1802_v50  ;;  %1622 = vmatprep.mubr.msk.bf16.mxu0 %vm894_vm2, %v842_v49  ;;  %v1874_v53 = vmov 1966171168  }
  0xb6   : > { %v851_v61 = vpack.c.bf16 %v833_v60, %v832_v59  ;;  %v816_v62 = vsel %vm805_vm1, %v783_v57, %v1796_v56  ;;  %v817_v63 = vsel %vm805_vm1, %v784_v58, %v1797_v55  ;;  %v1810_v0 = vpop.permute.xlu1 %1809  ;;  %v1144_v54 = vunpack.c.l.s4 %v1874_v53  ;;  %v2180_v59 = vld [vmem:[%s407_s7 + $0x8] sm:$0xff]  ;;  %v2182_v60 = vld [vmem:[%s407_s7] sm:$0xff] }
  0xb7   : > { %v843_v1 = vpack.c.bf16 %v817_v63, %v816_v62  ;;  %v1805_v2 = vpop.permute.xlu0 %1804  ;;  %v1812_v3 = vunpack.i.h.bf16 %v1810_v0  ;;  %v1811_v4 = vunpack.i.l.bf16 %v1810_v0  ;;  %v1146_v55 = vlaneseq }
  0xb8   : > { %1639 = vmatmul.mubr.msk.bf16.gmra.mrb[8].mxu1 %vm894_vm2, %v851_v61  ;;  %v1807_v8 = vunpack.i.h.bf16 %v1805_v2  ;;  %v1806_v9 = vunpack.i.l.bf16 %v1805_v2  ;;  %v1145_v56 = vunpack.c.0.s8 %v1144_v54 }
  0xb9   : > { %1623 = vmatmul.mubr.msk.bf16.gmra.mrb[8].mxu0 %vm894_vm2, %v843_v1  ;;  %v801_v13 = vsel %vm772_vm0, %v448_v6, %v1811_v4  ;;  %v802_v14 = vsel %vm772_vm0, %v449_v7, %v1812_v3  ;;  %v1147_v57 = vshrl.u32 %v1146_v55, 7  ;;  %v2197_v6 = vld [vmem:[%s398_s9] sm:$0xff] }
  0xba   : > { %v1820_v5 = vpop.permute.xlu1 %1819  ;;  %v785_v16 = vsel %vm772_vm0, %v432_v11, %v1806_v9  ;;  %v786_v17 = vsel %vm772_vm0, %v433_v12, %v1807_v8  ;;  %v2200_v8 = vld [vmem:[%s398_s9 + $0x8] sm:$0xff] }
  0xbb   : > { %v1815_v10 = vpop.permute.xlu0 %1814  ;;  %v1822_v21 = vunpack.i.h.bf16 %v1820_v5  ;;  %v1821_v22 = vunpack.i.l.bf16 %v1820_v5  ;;  %v2178_v58 = vsub.s32 %v1145_v56, %v1147_v57  ;;  %v2191_v1 = vsub.s32 0, %v1147_v57 }
  0xbc   : > { %v1817_v27 = vunpack.i.h.bf16 %v1815_v10  ;;  %v1816_v28 = vunpack.i.l.bf16 %v1815_v10 }
  0xbd   : > { %v803_v41 = vsel %vm772_vm0, %v450_v25, %v1821_v22  ;;  %v804_v42 = vsel %vm772_vm0, %v451_v26, %v1822_v21  ;;  %v1198_v61 = vrot.slane %v2180_v59, %v2178_v58  ;;  %v1149_v62 = vrot.slane %v2182_v60, %v2178_v58 }
  0xbe   : > { %v1830_v15 = vpop.permute.xlu1 %1829  ;;  %v787_v45 = vsel %vm772_vm0, %v434_v31, %v1816_v28  ;;  %v788_v46 = vsel %vm772_vm0, %v435_v32, %v1817_v27 }
  0xbf   : > { %v1832_v18 = vunpack.i.h.bf16 %v1830_v15  ;;  %v1831_v19 = vunpack.i.l.bf16 %v1830_v15  ;;  %v1825_v20 = vpop.permute.xlu0 %1824  ;;  %v1206_v63 = vcombine.high %v1198_v61, %v1198_v61  ;;  %v1157_v0 = vcombine.high %v1149_v62, %v1149_v62 }
  0xc0   : > { %v1827_v23 = vunpack.i.h.bf16 %v1825_v20  ;;  %v1826_v24 = vunpack.i.l.bf16 %v1825_v20  ;;  %v1214_v4 = vrot.slane %v1198_v61, %v2178_v58  ;;  %v1165_v5 = vrot.slane %v1149_v62, %v2178_v58 }
  0xc1   : > { %v834_v29 = vsel %vm805_vm1, %v801_v13, %v1831_v19  ;;  %v835_v30 = vsel %vm805_vm1, %v802_v14, %v1832_v18  ;;  %v1228_v2 = vrot.slane %v1206_v63, %v2178_v58  ;;  %v1179_v3 = vrot.slane %v1157_v0, %v2178_v58 }
  0xc2   : > { %v852_v33 = vpack.c.bf16 %v835_v30, %v834_v29  ;;  %v818_v34 = vsel %vm805_vm1, %v785_v16, %v1826_v24  ;;  %v819_v35 = vsel %vm805_vm1, %v786_v17, %v1827_v23  ;;  %v1840_v36 = vpop.permute.xlu1 %1839  ;;  %v1275_v11 = vrot.slane %v1214_v4, %v2191_v1 }
  0xc3   : > { %v844_v37 = vpack.c.bf16 %v819_v35, %v818_v34  ;;  %v1842_v38 = vunpack.i.h.bf16 %v1840_v36  ;;  %v1841_v39 = vunpack.i.l.bf16 %v1840_v36  ;;  %v1835_v40 = vpop.permute.xlu0 %1834  ;;  %v1279_v7 = vrot.slane %v1228_v2, %v2191_v1 }
  0xc4   : > { %v1837_v43 = vunpack.i.h.bf16 %v1835_v40  ;;  %v1836_v44 = vunpack.i.l.bf16 %v1835_v40  ;;  %1642 = vmatprep.mubr.msk.bf16.mxu1 %vm894_vm2, %v852_v33  ;;  %v1247_v9 = vrot.slane %v1179_v3, %v2191_v1  ;;  %v1243_v14 = vrot.slane %v1165_v5, %v2191_v1 }
  0xc5   : > { %v836_v47 = vsel %vm805_vm1, %v803_v41, %v1841_v39  ;;  %v837_v48 = vsel %vm805_vm1, %v804_v42, %v1842_v38  ;;  %1626 = vmatprep.mubr.msk.bf16.mxu0 %vm894_vm2, %v844_v37  ;;  %v1238_v36 = vcombine.high %v1228_v2, %v1228_v2  ;;  %v1189_v37 = vcombine.high %v1179_v3, %v1179_v3 }
  0xc6   : > { %v853_v49 = vpack.c.bf16 %v837_v48, %v836_v47  ;;  %v820_v50 = vsel %vm805_vm1, %v787_v45, %v1836_v44  ;;  %v821_v51 = vsel %vm805_vm1, %v788_v46, %v1837_v43  ;;  %v1236_v38 = vcombine.high %v1214_v4, %v1214_v4 }
  0xc7   : > { %v845_v52 = vpack.c.bf16 %v821_v51, %v820_v50  ;;  %v1187_v39 = vcombine.high %v1165_v5, %v1165_v5  ;;  %v1142_v40 = vcombine.high %v2182_v60, %v2182_v60  ;;  %v1287_v41 = vrot.slane %v1238_v36, %v2191_v1 }
  0xc8   : > { %1643 = vmatmul.mubr.msk.bf16.gmra.mrb[12].mxu1 %vm894_vm2, %v853_v49  ;;  %v1191_v42 = vcombine.high %v2180_v59, %v2180_v59  ;;  %v1255_v43 = vrot.slane %v1189_v37, %v2191_v1  ;;  %v1283_v45 = vrot.slane %v1236_v38, %v2191_v1 }
  0xc9   : > { %1627 = vmatmul.mubr.msk.bf16.gmra.mrb[12].mxu0 %vm894_vm2, %v845_v52  ;;  %v1251_v48 = vrot.slane %v1187_v39, %v2191_v1  ;;  %v1156_v54 = vrot.slane %v1142_v40, %v2178_v58 }
  0xca   : > { %v1205_v61 = vrot.slane %v1191_v42, %v2178_v58 }
 0x16b   : > { %v1632_v10 = vpop.f32.mrb[0].mxu1 }
 0x16c   : > { %v1616_v12 = vpop.f32.mrb[0].mxu0  ;;  %v1124_v13 = vadd.f32 %v1632_v10, %v2197_v6  ;;  %v1041_v15 = vpop.f32.mrb[1].mxu1 }
 0x16d   : > { %v1108_v16 = vadd.f32 %v1616_v12, %v2197_v6  ;;  %v977_v17 = vpop.f32.mrb[1].mxu0  ;;  %v1122_v18 = vadd.f32 %v2197_v6, %v1041_v15  ;;  %v1633_v19 = vpop.f32.mrb[2].mxu1  ;;  %v1207_v12 = vcombine.high %v1205_v61, %v1205_v61 }
 0x16e   : > { %v1338_v20 = vadd.f32 %v1279_v7, %v1124_v13  ;;  %v1106_v21 = vadd.f32 %v2197_v6, %v977_v17  ;;  %v1617_v22 = vpop.f32.mrb[2].mxu0  ;;  %v1125_v23 = vadd.f32 %v1633_v19, %v2200_v8  ;;  %v1044_v24 = vpop.f32.mrb[3].mxu1  ;;  %v1158_v13 = vcombine.high %v1156_v54, %v1156_v54 }
 0x16f   : > { %v1322_v25 = vadd.f32 %v1247_v9, %v1108_v16  ;;  %v1336_v26 = vadd.f32 %v1275_v11, %v1122_v18  ;;  %v1109_v27 = vadd.f32 %v1617_v22, %v2200_v8  ;;  %v980_v28 = vpop.f32.mrb[3].mxu0  ;;  %v1123_v29 = vadd.f32 %v2200_v8, %v1044_v24 }
 0x170   : > { %1370 = vst.msk [vmem:[%s2210_s12 + $0x90] sm:$0xff] %vm805_vm1, %v1338_v20  ;;  %v1320_v30 = vadd.f32 %v1243_v14, %v1106_v21  ;;  %v1339_v31 = vadd.f32 %v1279_v7, %v1125_v23  ;;  %v1107_v32 = vadd.f32 %v2200_v8, %v980_v28  ;;  %v1186_v15 = vrot.slane %v1158_v13, %v2178_v58 }
 0x171   : > { %1354 = vst.msk [vmem:[%s2210_s12 + $0x10] sm:$0xff] %vm805_vm1, %v1322_v25  ;;  %1368 = vst.msk [vmem:[%s2210_s12 + $0x80] sm:$0xff] %vm805_vm1, %v1336_v26  ;;  %v1323_v33 = vadd.f32 %v1247_v9, %v1109_v27  ;;  %v1337_v34 = vadd.f32 %v1275_v11, %v1123_v29  ;;  %v1221_v16 = vrot.slane %v1205_v61, %v2178_v58 }
 0x172   : > { %1352 = vst.msk [vmem:[%s2210_s12] sm:$0xff] %vm805_vm1, %v1320_v30  ;;  %1371 = vst.msk [vmem:[%s2210_s12 + $0x98] sm:$0xff] %vm805_vm1, %v1339_v31  ;;  %v1321_v35 = vadd.f32 %v1243_v14, %v1107_v32  ;;  %v1235_v14 = vrot.slane %v1207_v12, %v2178_v58  ;;  %v1172_v17 = vrot.slane %v1156_v54, %v2178_v58 }
 0x173   : > { %1355 = vst.msk [vmem:[%s2210_s12 + $0x18] sm:$0xff] %vm805_vm1, %v1323_v33  ;;  %1369 = vst.msk [vmem:[%s2210_s12 + $0x88] sm:$0xff] %vm805_vm1, %v1337_v34  ;;  %v1263_v19 = vrot.slane %v1186_v15, %v2191_v1  ;;  %v1291_v21 = vrot.slane %v1221_v16, %v2191_v1 }
 0x174   : > { %1353 = vst.msk [vmem:[%s2210_s12 + $0x8] sm:$0xff] %vm805_vm1, %v1321_v35  ;;  %v1295_v18 = vrot.slane %v1235_v14, %v2191_v1  ;;  %v1259_v24 = vrot.slane %v1172_v17, %v2191_v1 }
 0x17b   : > { %v1636_v44 = vpop.f32.mrb[4].mxu1 }
 0x17c   : > { %v1620_v46 = vpop.f32.mrb[4].mxu0  ;;  %v1128_v47 = vadd.f32 %v1636_v44, %v2197_v6  ;;  %v1057_v49 = vpop.f32.mrb[5].mxu1 }
 0x17d   : > { %v1112_v50 = vadd.f32 %v1620_v46, %v2197_v6  ;;  %v993_v51 = vpop.f32.mrb[5].mxu0  ;;  %v1126_v52 = vadd.f32 %v2197_v6, %v1057_v49  ;;  %v1637_v53 = vpop.f32.mrb[6].mxu1  ;;  %v1190_v46 = vcombine.high %v1186_v15, %v1186_v15 }
 0x17e   : > { %v1342_v55 = vadd.f32 %v1287_v41, %v1128_v47  ;;  %v1110_v56 = vadd.f32 %v2197_v6, %v993_v51  ;;  %v1621_v57 = vpop.f32.mrb[6].mxu0  ;;  %v1129_v59 = vadd.f32 %v1637_v53, %v2200_v8  ;;  %v1060_v60 = vpop.f32.mrb[7].mxu1  ;;  %v1237_v47 = vcombine.high %v1221_v16, %v1221_v16 }
 0x17f   : > { %v1326_v62 = vadd.f32 %v1255_v43, %v1112_v50  ;;  %v1340_v63 = vadd.f32 %v1283_v45, %v1126_v52  ;;  %v1113_v0 = vadd.f32 %v1621_v57, %v2200_v8  ;;  %v996_v2 = vpop.f32.mrb[7].mxu0  ;;  %v1127_v3 = vadd.f32 %v2200_v8, %v1060_v60 }
 0x180   : > { %1374 = vst.msk [vmem:[%s2210_s12 + $0xb0] sm:$0xff] %vm805_vm1, %v1342_v55  ;;  %v1324_v4 = vadd.f32 %v1251_v48, %v1110_v56  ;;  %v1343_v5 = vadd.f32 %v1287_v41, %v1129_v59  ;;  %v1111_v7 = vadd.f32 %v2200_v8, %v996_v2  ;;  %v1271_v50 = vrot.slane %v1190_v46, %v2191_v1 }
 0x181   : > { %1358 = vst.msk [vmem:[%s2210_s12 + $0x30] sm:$0xff] %vm805_vm1, %v1326_v62  ;;  %1372 = vst.msk [vmem:[%s2210_s12 + $0xa0] sm:$0xff] %vm805_vm1, %v1340_v63  ;;  %v1327_v9 = vadd.f32 %v1255_v43, %v1113_v0  ;;  %v1341_v10 = vadd.f32 %v1283_v45, %v1127_v3  ;;  %v1239_v45 = vcombine.high %v1235_v14, %v1235_v14 }
 0x182   : > { %1356 = vst.msk [vmem:[%s2210_s12 + $0x20] sm:$0xff] %vm805_vm1, %v1324_v4  ;;  %1375 = vst.msk [vmem:[%s2210_s12 + $0xb8] sm:$0xff] %vm805_vm1, %v1343_v5  ;;  %v1325_v11 = vadd.f32 %v1251_v48, %v1111_v7  ;;  %v1188_v48 = vcombine.high %v1172_v17, %v1172_v17  ;;  %v1299_v52 = vrot.slane %v1237_v47, %v2191_v1 }
 0x183   : > { %1359 = vst.msk [vmem:[%s2210_s12 + $0x38] sm:$0xff] %vm805_vm1, %v1327_v9  ;;  %1373 = vst.msk [vmem:[%s2210_s12 + $0xa8] sm:$0xff] %vm805_vm1, %v1341_v10  ;;  %v1303_v49 = vrot.slane %v1239_v45, %v2191_v1 }
 0x184   : > { %1357 = vst.msk [vmem:[%s2210_s12 + $0x28] sm:$0xff] %vm805_vm1, %v1325_v11  ;;  %v1267_v55 = vrot.slane %v1188_v48, %v2191_v1 }
 0x18b   : > { %v1640_v20 = vpop.f32.mrb[8].mxu1 }
 0x18c   : > { %v1624_v22 = vpop.f32.mrb[8].mxu0  ;;  %v1132_v23 = vadd.f32 %v1640_v20, %v2197_v6  ;;  %v1073_v25 = vpop.f32.mrb[9].mxu1 }
 0x18d   : > { %v1116_v26 = vadd.f32 %v1624_v22, %v2197_v6  ;;  %v1009_v27 = vpop.f32.mrb[9].mxu0  ;;  %v1130_v28 = vadd.f32 %v2197_v6, %v1073_v25  ;;  %v1641_v58 = vpop.f32.mrb[10].mxu1 }
 0x18e   : > { %v1346_v29 = vadd.f32 %v1295_v18, %v1132_v23  ;;  %v1114_v30 = vadd.f32 %v2197_v6, %v1009_v27  ;;  %v1625_v31 = vpop.f32.mrb[10].mxu0  ;;  %v1133_v32 = vadd.f32 %v1641_v58, %v2200_v8  ;;  %v1076_v33 = vpop.f32.mrb[11].mxu1 }
 0x18f   : > { %v1330_v34 = vadd.f32 %v1263_v19, %v1116_v26  ;;  %v1344_v35 = vadd.f32 %v1291_v21, %v1130_v28  ;;  %v1117_v36 = vadd.f32 %v1625_v31, %v2200_v8  ;;  %v1012_v37 = vpop.f32.mrb[11].mxu0  ;;  %v1131_v38 = vadd.f32 %v2200_v8, %v1076_v33 }
 0x190   : > { %1378 = vst.msk [vmem:[%s2210_s12 + $0xd0] sm:$0xff] %vm805_vm1, %v1346_v29  ;;  %v1328_v39 = vadd.f32 %v1259_v24, %v1114_v30  ;;  %v1347_v40 = vadd.f32 %v1295_v18, %v1133_v32  ;;  %v1115_v41 = vadd.f32 %v2200_v8, %v1012_v37 }
 0x191   : > { %1362 = vst.msk [vmem:[%s2210_s12 + $0x50] sm:$0xff] %vm805_vm1, %v1330_v34  ;;  %1376 = vst.msk [vmem:[%s2210_s12 + $0xc0] sm:$0xff] %vm805_vm1, %v1344_v35  ;;  %v1331_v42 = vadd.f32 %v1263_v19, %v1117_v36  ;;  %v1345_v43 = vadd.f32 %v1291_v21, %v1131_v38 }
 0x192   : > { %1360 = vst.msk [vmem:[%s2210_s12 + $0x40] sm:$0xff] %vm805_vm1, %v1328_v39  ;;  %1379 = vst.msk [vmem:[%s2210_s12 + $0xd8] sm:$0xff] %vm805_vm1, %v1347_v40  ;;  %v1329_v44 = vadd.f32 %v1259_v24, %v1115_v41 }
 0x193   : > { %1363 = vst.msk [vmem:[%s2210_s12 + $0x58] sm:$0xff] %vm805_vm1, %v1331_v42  ;;  %1377 = vst.msk [vmem:[%s2210_s12 + $0xc8] sm:$0xff] %vm805_vm1, %v1345_v43 }
 0x194   : > { %1361 = vst.msk [vmem:[%s2210_s12 + $0x48] sm:$0xff] %vm805_vm1, %v1329_v44 }
 0x19b   : > { %v1644_v51 = vpop.f32.mrb[12].mxu1 }
 0x19c   : > { %v1628_v53 = vpop.f32.mrb[12].mxu0  ;;  %v1136_v54 = vadd.f32 %v1644_v51, %v2197_v6  ;;  %v1089_v56 = vpop.f32.mrb[13].mxu1 }
 0x19d   : > { %v1120_v57 = vadd.f32 %v1628_v53, %v2197_v6  ;;  %v1025_v59 = vpop.f32.mrb[13].mxu0  ;;  %v1134_v60 = vadd.f32 %v2197_v6, %v1089_v56  ;;  %v1645_v61 = vpop.f32.mrb[14].mxu1 }
 0x19e   : > { %v1350_v62 = vadd.f32 %v1303_v49, %v1136_v54  ;;  %v1118_v63 = vadd.f32 %v2197_v6, %v1025_v59  ;;  %v1629_v0 = vpop.f32.mrb[14].mxu0  ;;  %v1137_v2 = vadd.f32 %v1645_v61, %v2200_v8  ;;  %v1092_v3 = vpop.f32.mrb[15].mxu1 }
 0x19f   : > { %v1334_v1 = vadd.f32 %v1271_v50, %v1120_v57  ;;  %v1348_v4 = vadd.f32 %v1299_v52, %v1134_v60  ;;  %v1121_v5 = vadd.f32 %v1629_v0, %v2200_v8  ;;  %v1028_v7 = vpop.f32.mrb[15].mxu0  ;;  %v1135_v9 = vadd.f32 %v2200_v8, %v1092_v3 }
 0x1a0   : > { %1382 = vst.msk [vmem:[%s2210_s12 + $0xf0] sm:$0xff] %vm805_vm1, %v1350_v62  ;;  %v1332_v10 = vadd.f32 %v1267_v55, %v1118_v63  ;;  %v1351_v6 = vadd.f32 %v1303_v49, %v1137_v2  ;;  %v1119_v11 = vadd.f32 %v2200_v8, %v1028_v7 }
 0x1a1   : > { %1366 = vst.msk [vmem:[%s2210_s12 + $0x70] sm:$0xff] %vm805_vm1, %v1334_v1  ;;  %1380 = vst.msk [vmem:[%s2210_s12 + $0xe0] sm:$0xff] %vm805_vm1, %v1348_v4  ;;  %v1335_v12 = vadd.f32 %v1271_v50, %v1121_v5  ;;  %v1349_v13 = vadd.f32 %v1299_v52, %v1135_v9 }
 0x1a2   : > { %1364 = vst.msk [vmem:[%s2210_s12 + $0x60] sm:$0xff] %vm805_vm1, %v1332_v10  ;;  %1383 = vst.msk [vmem:[%s2210_s12 + $0xf8] sm:$0xff] %vm805_vm1, %v1351_v6  ;;  %v1333_v14 = vadd.f32 %v1267_v55, %v1119_v11 }
 0x1a3   : > { %1367 = vst.msk [vmem:[%s2210_s12 + $0x78] sm:$0xff] %vm805_vm1, %v1335_v12  ;;  %1381 = vst.msk [vmem:[%s2210_s12 + $0xe8] sm:$0xff] %vm805_vm1, %v1349_v13 }
 0x1a4   : > { %1365 = vst.msk [vmem:[%s2210_s12 + $0x68] sm:$0xff] %vm805_vm1, %v1333_v14 }
 0x1a5 PF: > { %s16_s23 = sadd.s32 1, %s1870_s23   ;;  %s2345_s21 = smov %s1866_s22 }
 0x1a6   : > { %p13_p5 = scmp.ge.s32.totalorder %s16_s23, 4   ;;  %s2346_s22 = smov %s2348_s24 }
 0x1a8   :  { %15 = sbr.rel (!%p13_p5) target bundleno = 2 (0x2), region = 86 }

</bundles_post_ra>
